<compile_context>
chip_gen: v5e
topology: v5e:2x2
jax: 0.10.0
libtpu: 0.0.40
codegen_flags: <defaults>
</compile_context>

<pallas_src>
import functools

import jax
import jax.numpy as jnp
from jax.experimental import pallas as pl
from jax.experimental.pallas import tpu as pltpu


_LANES = 512                   # lane width (multiple of 128): unmasked full-width stores
_SMALL_BYTES = 256 * 1024      # below this per array, a fused XLA add beats a kernel launch
_SINGLE_BLOCK_BYTES = 4 << 20  # <= 4 MiB/array: whole-array block, grid-less pallas_call
_VMEM_LIMIT = 32 << 20         # raises v5e's 16 MiB scoped default; safe on v6e/v7x


def _add_kernel(x_ref, y_ref, o_ref):
    # Elementwise hot path: whole VMEM tile, VPU add, lane-dense unmasked stores.
    o_ref[...] = x_ref[...] + y_ref[...]


def _round_up(a: int, b: int) -> int:
    return ((a + b - 1) // b) * b


@functools.lru_cache(maxsize=None)
def _block_rows_for_chip() -> int:
    """Rows per pipelined tile: 4 MiB tiles on v7x, 2 MiB elsewhere (f32 terms)."""
    try:
        vmem = getattr(pltpu.get_tpu_info(), "vmem_capacity_bytes", None)
    except Exception:
        vmem = None
    if vmem is not None and vmem <= (64 << 20):
        # v7x: 64 MiB VMEM/TC, ~3.2 TB/s HBM -> bigger tiles amortize per-step overhead.
        # 2048x512 f32 = 4 MiB/tile -> 3 arrays x 2 buffers = 24 MiB resident (< 32 MiB).
        return 2048
    # v5e / v6e / unknown: 1024x512 f32 = 2 MiB/tile -> 12 MiB resident.
    return 1024


def _pallas_add_aligned(x2: jax.Array, y2: jax.Array) -> jax.Array:
    """x2, y2: (rows, _LANES) views.  Returns x2 + y2 with no wrapper copies."""
    rows, cols = x2.shape
    itemsize = jnp.dtype(x2.dtype).itemsize
    # Sub-32-bit dtypes pack along sublanes: keep block rows a multiple of the packed tile.
    sublane_mult = 8 * max(1, 4 // itemsize)

    if rows * cols * itemsize <= _SINGLE_BLOCK_BYTES:
        # Single whole-array block (exempt from (8,128) divisibility): one DMA in,
        # one out, no multi-step pipeline overhead.
        return pl.pallas_call(
            _add_kernel,
            out_shape=jax.ShapeDtypeStruct((rows, cols), x2.dtype),
            compiler_params=pltpu.CompilerParams(vmem_limit_bytes=_VMEM_LIMIT),
        )(x2, y2)

    block_rows = min(_block_rows_for_chip(), _round_up(rows, sublane_mult))
    grid = (pl.cdiv(rows, block_rows),)  # last block clipped if rows % block_rows != 0
    spec = pl.BlockSpec((block_rows, cols), lambda i: (i, 0))
    return pl.pallas_call(
        _add_kernel,
        out_shape=jax.ShapeDtypeStruct((rows, cols), x2.dtype),
        grid=grid,
        in_specs=[spec, spec],
        out_specs=spec,
        compiler_params=pltpu.CompilerParams(
            # TODO(synk): on v7x, pltpu.CORE_PARALLEL (or pl.core_map over the 2-TC mesh)
            # would shard independent row-tiles across both TensorCores; kept "parallel"
            # here for portability across single-TC v5e/v6e.
            dimension_semantics=("parallel",),
            vmem_limit_bytes=_VMEM_LIMIT,
        ),
    )(x2, y2)


def pallas_add(x: jax.Array, y: jax.Array) -> jax.Array:
    """Elementwise add via a lane/sublane-dense, copy-free-wrapper Pallas kernel."""
    assert x.shape == y.shape and x.dtype == y.dtype
    orig_shape = x.shape
    n = x.size
    xf = x.reshape(-1)
    yf = y.reshape(-1)

    n_main = (n // _LANES) * _LANES
    if n_main == 0:
        return (xf + yf).reshape(orig_shape)

    rows = n_main // _LANES
    if n_main == n:
        # Lane-aligned size: pure bitcast reshapes, zero extra HBM traffic outside
        # the kernel's own 3N bytes.
        out2 = _pallas_add_aligned(xf.reshape(rows, _LANES), yf.reshape(rows, _LANES))
        return out2.reshape(orig_shape)

    # Ragged size: Pallas kernel on the aligned prefix, plain XLA add on the <512
    # element tail (avoids padding both inputs and slicing the full output).
    main = _pallas_add_aligned(
        xf[:n_main].reshape(rows, _LANES), yf[:n_main].reshape(rows, _LANES)
    ).reshape(-1)
    tail = xf[n_main:] + yf[n_main:]
    return jnp.concatenate([main, tail]).reshape(orig_shape)


def basic_module_forward(x: jax.Array, y: jax.Array) -> jax.Array:
    """BasicModule.forward: x + y (Pallas kernel above a byte-size threshold)."""
    if x.shape != y.shape or x.dtype != y.dtype:
        # Broadcasting / mixed-dtype adds: let XLA handle them.
        return x + y
    if x.size * jnp.dtype(x.dtype).itemsize < _SMALL_BYTES:
        # Tiny inputs (the module's own (10,) spec): a custom-call launch is pure
        # overhead; let XLA fuse the add.
        return x + y
    return pallas_add(x, y)


if __name__ == "__main__":
    key = jax.random.PRNGKey(0)
    kx, ky = jax.random.split(key)

    # 1) The module's own spec: two randn(10) vectors (small fast path).
    x_small = jax.random.normal(kx, (10,), dtype=jnp.float32)
    y_small = jax.random.normal(ky, (10,), dtype=jnp.float32)
    out_small = basic_module_forward(x_small, y_small)
    jax.block_until_ready(out_small)
    assert out_small.shape == (10,)
    assert jnp.allclose(out_small, x_small + y_small, atol=1e-6)

    # 2) Lane-aligned medium size -> single whole-array block (grid-less call).
    x_med = jax.random.normal(kx, (256, 512), dtype=jnp.float32)
    y_med = jax.random.normal(ky, (256, 512), dtype=jnp.float32)
    out_med = pallas_add(x_med, y_med)
    jax.block_until_ready(out_med)
    assert jnp.allclose(out_med, x_med + y_med, atol=1e-6)

    # 3) Tiled pipelined path with a clipped final block (rows % block_rows != 0).
    rows_big = 2 * 1024 + 40  # ~4.1 MiB/array -> multi-block grid on every chip branch
    x_big = jax.random.normal(kx, (rows_big, 512), dtype=jnp.float32)
    y_big = jax.random.normal(ky, (rows_big, 512), dtype=jnp.float32)
    out_big = pallas_add(x_big, y_big)
    jax.block_until_ready(out_big)
    assert out_big.shape == (rows_big, 512)
    assert jnp.allclose(out_big, x_big + y_big, atol=1e-6)

    # 4) Ragged flat size: aligned prefix via Pallas + tiny XLA tail.
    n_rag = 600 * _LANES + 137
    x_rag = jax.random.normal(kx, (n_rag,), dtype=jnp.float32)
    y_rag = jax.random.normal(ky, (n_rag,), dtype=jnp.float32)
    out_rag = pallas_add(x_rag, y_rag)
    jax.block_until_ready(out_rag)
    assert out_rag.shape == (n_rag,)
    assert jnp.allclose(out_rag, x_rag + y_rag, atol=1e-6)

    print("KERNEL_OK")
</pallas_src>

<mosaic_0001>
module attributes {stable_mosaic.version = 11 : i64} {
  func.func @_add_kernel(%arg0: memref<256x512xf32, #tpu.memory_space<vmem>>, %arg1: memref<256x512xf32, #tpu.memory_space<vmem>>, %arg2: memref<256x512xf32, #tpu.memory_space<vmem>>) attributes {dimension_semantics = [], scalar_prefetch = 0 : i64, scratch_operands = 0 : i64, tpu.core_type = #tpu.core_type<tc>} {
    %c0 = arith.constant 0 : index
    %c0_0 = arith.constant 0 : index
    %0 = vector.load %arg0[%c0, %c0_0] : memref<256x512xf32, #tpu.memory_space<vmem>>, vector<256x512xf32>
    %c0_1 = arith.constant 0 : index
    %c0_2 = arith.constant 0 : index
    %1 = vector.load %arg1[%c0_1, %c0_2] : memref<256x512xf32, #tpu.memory_space<vmem>>, vector<256x512xf32>
    %2 = arith.addf %0, %1 : vector<256x512xf32>
    %c0_3 = arith.constant 0 : index
    %c0_4 = arith.constant 0 : index
    %3 = vector.load %arg2[%c0_3, %c0_4] : memref<256x512xf32, #tpu.memory_space<vmem>>, vector<256x512xf32>
    tpu.vector_store %arg2[%c0_3, %c0_4], %2 {strides = array<i32>} : memref<256x512xf32, #tpu.memory_space<vmem>>, vector<256x512xf32>,
    return
  }
}

</mosaic_0001>

<bundles_post_ra>
// kernel: tpu_custom_call.1
= control target key start
LH: loop header
LB: loop body
LE: loop exit
PB: predicated region body
PF: predicated region fallthrough
CT: control target
= control target key end

     0   :  { %7 = vsyncpa [#allocation3], 0  ;;  %s697_s0 = inlined_call_operand.hbm [shape: f32[256,512], index: 0, kind: input, shape index: {}]   ;;  %s698_s1 = inlined_call_operand.hbm [shape: f32[256,512], index: 1, kind: input, shape index: {}]   ;;  %s699_s2 = inlined_call_operand.hbm [shape: f32[256,512], index: 2, kind: output, shape index: {}]  }
   0x1   :  { %8 = vsyncpa [#allocation6], 0 }
   0x2   :  { %9 = vsyncpa [#allocation4], 0  ;;  %s14_s11 = sshll.u32 %s697_s0, 4  ;;  %s659_s12 = smov [#allocation2]   ;;  %s15_s11 = int_to_ptr.hbm [resolvable:$true] %s14_s11 }
   0x3   :  { %s16_s13 = sshll.u32 %s659_s12, 4  ;;  %s27_s16 = sshll.u32 %s698_s1, 4  ;;  %s17_s13 = int_to_ptr.vmem [resolvable:$true] %s16_s13  ;;  %s28_s16 = int_to_ptr.hbm [resolvable:$true] %s27_s16 }
   0x4   :  { %s660_s17 = smov 512   ;;  %s661_s18 = smov 32  }
   0x5   :  { %22 = dma.hbm_to_vmem [thread:$0]  %s15_s11, 16384, %s17_s13, [#allocation3], %s660_s17, %s660_s17, %s661_s18  }
   0x6   :  { %s662_s19 = smov [#allocation5]  }
   0x7   :  { %s29_s20 = sshll.u32 %s662_s19, 4  ;;  %s30_s20 = int_to_ptr.vmem [resolvable:$true] %s29_s20 }
   0x8   :  { %35 = dma.hbm_to_vmem [thread:$0]  %s28_s16, 16384, %s30_s20, [#allocation6], %s660_s17, %s660_s17, %s661_s18  }
   0x9   :  { %653 = dma.done.wait [#allocation3], 16384  }
   0xa   :  { %654 = vsyncadd [#allocation3], 4294950912 }
   0xb   :  { %655 = dma.done.wait [#allocation6], 16384  }
   0xc   :  { %656 = vsyncadd [#allocation6], 4294950912  ;;  %v44_v0 = vld [vmem:[#allocation2] sm:$0xff]  ;;  %v45_v2 = vld [vmem:[#allocation2 + $0x8] sm:$0xff]  ;;  %s663_s0 = smov [#allocation7]   ;;  %s562_s23 = sshll.u32 %s699_s2, 4  ;;  %s563_s23 = int_to_ptr.hbm [resolvable:$true] %s562_s23 }
   0xd   :  { %v172_v1 = vld [vmem:[#allocation5] sm:$0xff]  ;;  %v173_v4 = vld [vmem:[#allocation5 + $0x8] sm:$0xff]  ;;  %v46_v5 = vld [vmem:[#allocation2 + $0x10] sm:$0xff]  ;;  %s560_s1 = sshll.u32 %s663_s0, 4  ;;  %s561_s1 = int_to_ptr.vmem [resolvable:$true] %s560_s1 }
   0xe   :  { %v300_v3 = vadd.f32 %v172_v1, %v44_v0  ;;  %v174_v6 = vld [vmem:[#allocation5 + $0x10] sm:$0xff]  ;;  %v301_v7 = vadd.f32 %v173_v4, %v45_v2  ;;  %v47_v9 = vld [vmem:[#allocation2 + $0x18] sm:$0xff]  ;;  %v48_v11 = vld [vmem:[#allocation2 + $0x20] sm:$0xff] }
   0xf   :  { %v302_v8 = vadd.f32 %v174_v6, %v46_v5  ;;  %v175_v10 = vld [vmem:[#allocation5 + $0x18] sm:$0xff]  ;;  %v176_v13 = vld [vmem:[#allocation5 + $0x20] sm:$0xff]  ;;  %v49_v14 = vld [vmem:[#allocation2 + $0x28] sm:$0xff] }
  0x10   :  { %428 = vst [vmem:[#allocation7] sm:$0xff] %v300_v3  ;;  %v303_v12 = vadd.f32 %v175_v10, %v47_v9  ;;  %v177_v15 = vld [vmem:[#allocation5 + $0x28] sm:$0xff]  ;;  %v304_v16 = vadd.f32 %v176_v13, %v48_v11  ;;  %v50_v18 = vld [vmem:[#allocation2 + $0x30] sm:$0xff]  ;;  %v51_v20 = vld [vmem:[#allocation2 + $0x38] sm:$0xff] }
  0x11   :  { %429 = vst [vmem:[#allocation7 + $0x8] sm:$0xff] %v301_v7  ;;  %v305_v17 = vadd.f32 %v177_v15, %v49_v14  ;;  %v178_v19 = vld [vmem:[#allocation5 + $0x30] sm:$0xff]  ;;  %v179_v22 = vld [vmem:[#allocation5 + $0x38] sm:$0xff]  ;;  %v52_v23 = vld [vmem:[#allocation2 + $0x40] sm:$0xff] }
  0x12   :  { %430 = vst [vmem:[#allocation7 + $0x10] sm:$0xff] %v302_v8  ;;  %v306_v21 = vadd.f32 %v178_v19, %v50_v18  ;;  %v180_v24 = vld [vmem:[#allocation5 + $0x40] sm:$0xff]  ;;  %v307_v25 = vadd.f32 %v179_v22, %v51_v20  ;;  %v53_v26 = vld [vmem:[#allocation2 + $0x48] sm:$0xff]  ;;  %v54_v28 = vld [vmem:[#allocation2 + $0x50] sm:$0xff] }
  0x13   :  { %431 = vst [vmem:[#allocation7 + $0x18] sm:$0xff] %v303_v12  ;;  %v181_v27 = vld [vmem:[#allocation5 + $0x48] sm:$0xff]  ;;  %v308_v29 = vadd.f32 %v180_v24, %v52_v23  ;;  %v182_v30 = vld [vmem:[#allocation5 + $0x50] sm:$0xff]  ;;  %v55_v31 = vld [vmem:[#allocation2 + $0x58] sm:$0xff] }
  0x14   :  { %432 = vst [vmem:[#allocation7 + $0x20] sm:$0xff] %v304_v16  ;;  %v183_v32 = vld [vmem:[#allocation5 + $0x58] sm:$0xff]  ;;  %v309_v33 = vadd.f32 %v181_v27, %v53_v26  ;;  %v56_v34 = vld [vmem:[#allocation2 + $0x60] sm:$0xff]  ;;  %v310_v36 = vadd.f32 %v182_v30, %v54_v28  ;;  %v57_v37 = vld [vmem:[#allocation2 + $0x68] sm:$0xff] }
  0x15   :  { %433 = vst [vmem:[#allocation7 + $0x28] sm:$0xff] %v305_v17  ;;  %v184_v35 = vld [vmem:[#allocation5 + $0x60] sm:$0xff]  ;;  %v185_v38 = vld [vmem:[#allocation5 + $0x68] sm:$0xff]  ;;  %v311_v39 = vadd.f32 %v183_v32, %v55_v31  ;;  %v58_v40 = vld [vmem:[#allocation2 + $0x70] sm:$0xff] }
  0x16   :  { %434 = vst [vmem:[#allocation7 + $0x30] sm:$0xff] %v306_v21  ;;  %v186_v41 = vld [vmem:[#allocation5 + $0x70] sm:$0xff]  ;;  %v312_v42 = vadd.f32 %v184_v35, %v56_v34  ;;  %v59_v43 = vld [vmem:[#allocation2 + $0x78] sm:$0xff]  ;;  %v313_v45 = vadd.f32 %v185_v38, %v57_v37  ;;  %v60_v46 = vld [vmem:[#allocation2 + $0x80] sm:$0xff] }
  0x17   :  { %435 = vst [vmem:[#allocation7 + $0x38] sm:$0xff] %v307_v25  ;;  %v187_v44 = vld [vmem:[#allocation5 + $0x78] sm:$0xff]  ;;  %v188_v47 = vld [vmem:[#allocation5 + $0x80] sm:$0xff]  ;;  %v314_v48 = vadd.f32 %v186_v41, %v58_v40  ;;  %v61_v49 = vld [vmem:[#allocation2 + $0x88] sm:$0xff] }
  0x18   :  { %436 = vst [vmem:[#allocation7 + $0x40] sm:$0xff] %v308_v29  ;;  %v189_v50 = vld [vmem:[#allocation5 + $0x88] sm:$0xff]  ;;  %v315_v51 = vadd.f32 %v187_v44, %v59_v43  ;;  %v62_v52 = vld [vmem:[#allocation2 + $0x90] sm:$0xff]  ;;  %v316_v54 = vadd.f32 %v188_v47, %v60_v46  ;;  %v63_v55 = vld [vmem:[#allocation2 + $0x98] sm:$0xff] }
  0x19   :  { %437 = vst [vmem:[#allocation7 + $0x48] sm:$0xff] %v309_v33  ;;  %v190_v53 = vld [vmem:[#allocation5 + $0x90] sm:$0xff]  ;;  %v191_v56 = vld [vmem:[#allocation5 + $0x98] sm:$0xff]  ;;  %v317_v57 = vadd.f32 %v189_v50, %v61_v49  ;;  %v64_v58 = vld [vmem:[#allocation2 + $0xa0] sm:$0xff] }
  0x1a   :  { %438 = vst [vmem:[#allocation7 + $0x50] sm:$0xff] %v310_v36  ;;  %v192_v59 = vld [vmem:[#allocation5 + $0xa0] sm:$0xff]  ;;  %v318_v60 = vadd.f32 %v190_v53, %v62_v52  ;;  %v65_v61 = vld [vmem:[#allocation2 + $0xa8] sm:$0xff]  ;;  %v319_v63 = vadd.f32 %v191_v56, %v63_v55  ;;  %v66_v0 = vld [vmem:[#allocation2 + $0xb0] sm:$0xff] }
  0x1b   :  { %439 = vst [vmem:[#allocation7 + $0x58] sm:$0xff] %v311_v39  ;;  %v193_v62 = vld [vmem:[#allocation5 + $0xa8] sm:$0xff]  ;;  %v194_v1 = vld [vmem:[#allocation5 + $0xb0] sm:$0xff]  ;;  %v320_v2 = vadd.f32 %v192_v59, %v64_v58  ;;  %v67_v3 = vld [vmem:[#allocation2 + $0xb8] sm:$0xff] }
  0x1c   :  { %440 = vst [vmem:[#allocation7 + $0x60] sm:$0xff] %v312_v42  ;;  %v195_v4 = vld [vmem:[#allocation5 + $0xb8] sm:$0xff]  ;;  %v321_v5 = vadd.f32 %v193_v62, %v65_v61  ;;  %v68_v6 = vld [vmem:[#allocation2 + $0xc0] sm:$0xff]  ;;  %v322_v8 = vadd.f32 %v194_v1, %v66_v0  ;;  %v69_v9 = vld [vmem:[#allocation2 + $0xc8] sm:$0xff] }
  0x1d   :  { %441 = vst [vmem:[#allocation7 + $0x68] sm:$0xff] %v313_v45  ;;  %v196_v7 = vld [vmem:[#allocation5 + $0xc0] sm:$0xff]  ;;  %v197_v10 = vld [vmem:[#allocation5 + $0xc8] sm:$0xff]  ;;  %v323_v11 = vadd.f32 %v195_v4, %v67_v3  ;;  %v70_v12 = vld [vmem:[#allocation2 + $0xd0] sm:$0xff] }
  0x1e   :  { %442 = vst [vmem:[#allocation7 + $0x70] sm:$0xff] %v314_v48  ;;  %v198_v13 = vld [vmem:[#allocation5 + $0xd0] sm:$0xff]  ;;  %v324_v14 = vadd.f32 %v196_v7, %v68_v6  ;;  %v71_v15 = vld [vmem:[#allocation2 + $0xd8] sm:$0xff]  ;;  %v325_v17 = vadd.f32 %v197_v10, %v69_v9  ;;  %v72_v18 = vld [vmem:[#allocation2 + $0xe0] sm:$0xff] }
  0x1f   :  { %443 = vst [vmem:[#allocation7 + $0x78] sm:$0xff] %v315_v51  ;;  %v199_v16 = vld [vmem:[#allocation5 + $0xd8] sm:$0xff]  ;;  %v200_v19 = vld [vmem:[#allocation5 + $0xe0] sm:$0xff]  ;;  %v326_v20 = vadd.f32 %v198_v13, %v70_v12  ;;  %v73_v21 = vld [vmem:[#allocation2 + $0xe8] sm:$0xff] }
  0x20   :  { %444 = vst [vmem:[#allocation7 + $0x80] sm:$0xff] %v316_v54  ;;  %v201_v22 = vld [vmem:[#allocation5 + $0xe8] sm:$0xff]  ;;  %v327_v23 = vadd.f32 %v199_v16, %v71_v15  ;;  %v74_v24 = vld [vmem:[#allocation2 + $0xf0] sm:$0xff]  ;;  %v328_v26 = vadd.f32 %v200_v19, %v72_v18  ;;  %v75_v27 = vld [vmem:[#allocation2 + $0xf8] sm:$0xff] }
  0x21   :  { %445 = vst [vmem:[#allocation7 + $0x88] sm:$0xff] %v317_v57  ;;  %v202_v25 = vld [vmem:[#allocation5 + $0xf0] sm:$0xff]  ;;  %v203_v28 = vld [vmem:[#allocation5 + $0xf8] sm:$0xff]  ;;  %v329_v29 = vadd.f32 %v201_v22, %v73_v21  ;;  %v76_v30 = vld [vmem:[#allocation2 + $0x100] sm:$0xff] }
  0x22   :  { %446 = vst [vmem:[#allocation7 + $0x90] sm:$0xff] %v318_v60  ;;  %v204_v31 = vld [vmem:[#allocation5 + $0x100] sm:$0xff]  ;;  %v330_v32 = vadd.f32 %v202_v25, %v74_v24  ;;  %v77_v33 = vld [vmem:[#allocation2 + $0x108] sm:$0xff]  ;;  %v331_v35 = vadd.f32 %v203_v28, %v75_v27  ;;  %v78_v36 = vld [vmem:[#allocation2 + $0x110] sm:$0xff] }
  0x23   :  { %447 = vst [vmem:[#allocation7 + $0x98] sm:$0xff] %v319_v63  ;;  %v205_v34 = vld [vmem:[#allocation5 + $0x108] sm:$0xff]  ;;  %v206_v37 = vld [vmem:[#allocation5 + $0x110] sm:$0xff]  ;;  %v332_v38 = vadd.f32 %v204_v31, %v76_v30  ;;  %v79_v39 = vld [vmem:[#allocation2 + $0x118] sm:$0xff] }
  0x24   :  { %448 = vst [vmem:[#allocation7 + $0xa0] sm:$0xff] %v320_v2  ;;  %v207_v40 = vld [vmem:[#allocation5 + $0x118] sm:$0xff]  ;;  %v333_v41 = vadd.f32 %v205_v34, %v77_v33  ;;  %v80_v42 = vld [vmem:[#allocation2 + $0x120] sm:$0xff]  ;;  %v334_v44 = vadd.f32 %v206_v37, %v78_v36  ;;  %v81_v45 = vld [vmem:[#allocation2 + $0x128] sm:$0xff] }
  0x25   :  { %449 = vst [vmem:[#allocation7 + $0xa8] sm:$0xff] %v321_v5  ;;  %v208_v43 = vld [vmem:[#allocation5 + $0x120] sm:$0xff]  ;;  %v209_v46 = vld [vmem:[#allocation5 + $0x128] sm:$0xff]  ;;  %v335_v47 = vadd.f32 %v207_v40, %v79_v39  ;;  %v82_v48 = vld [vmem:[#allocation2 + $0x130] sm:$0xff] }
  0x26   :  { %450 = vst [vmem:[#allocation7 + $0xb0] sm:$0xff] %v322_v8  ;;  %v210_v49 = vld [vmem:[#allocation5 + $0x130] sm:$0xff]  ;;  %v336_v50 = vadd.f32 %v208_v43, %v80_v42  ;;  %v83_v51 = vld [vmem:[#allocation2 + $0x138] sm:$0xff]  ;;  %v337_v53 = vadd.f32 %v209_v46, %v81_v45  ;;  %v84_v54 = vld [vmem:[#allocation2 + $0x140] sm:$0xff] }
  0x27   :  { %451 = vst [vmem:[#allocation7 + $0xb8] sm:$0xff] %v323_v11  ;;  %v211_v52 = vld [vmem:[#allocation5 + $0x138] sm:$0xff]  ;;  %v212_v55 = vld [vmem:[#allocation5 + $0x140] sm:$0xff]  ;;  %v338_v56 = vadd.f32 %v210_v49, %v82_v48  ;;  %v85_v57 = vld [vmem:[#allocation2 + $0x148] sm:$0xff] }
  0x28   :  { %452 = vst [vmem:[#allocation7 + $0xc0] sm:$0xff] %v324_v14  ;;  %v213_v58 = vld [vmem:[#allocation5 + $0x148] sm:$0xff]  ;;  %v339_v59 = vadd.f32 %v211_v52, %v83_v51  ;;  %v86_v60 = vld [vmem:[#allocation2 + $0x150] sm:$0xff]  ;;  %v340_v62 = vadd.f32 %v212_v55, %v84_v54  ;;  %v87_v63 = vld [vmem:[#allocation2 + $0x158] sm:$0xff] }
  0x29   :  { %453 = vst [vmem:[#allocation7 + $0xc8] sm:$0xff] %v325_v17  ;;  %v214_v61 = vld [vmem:[#allocation5 + $0x150] sm:$0xff]  ;;  %v215_v0 = vld [vmem:[#allocation5 + $0x158] sm:$0xff]  ;;  %v341_v1 = vadd.f32 %v213_v58, %v85_v57  ;;  %v88_v2 = vld [vmem:[#allocation2 + $0x160] sm:$0xff] }
  0x2a   :  { %454 = vst [vmem:[#allocation7 + $0xd0] sm:$0xff] %v326_v20  ;;  %v216_v3 = vld [vmem:[#allocation5 + $0x160] sm:$0xff]  ;;  %v342_v4 = vadd.f32 %v214_v61, %v86_v60  ;;  %v89_v5 = vld [vmem:[#allocation2 + $0x168] sm:$0xff]  ;;  %v343_v7 = vadd.f32 %v215_v0, %v87_v63  ;;  %v90_v8 = vld [vmem:[#allocation2 + $0x170] sm:$0xff] }
  0x2b   :  { %455 = vst [vmem:[#allocation7 + $0xd8] sm:$0xff] %v327_v23  ;;  %v217_v6 = vld [vmem:[#allocation5 + $0x168] sm:$0xff]  ;;  %v218_v9 = vld [vmem:[#allocation5 + $0x170] sm:$0xff]  ;;  %v344_v10 = vadd.f32 %v216_v3, %v88_v2  ;;  %v91_v11 = vld [vmem:[#allocation2 + $0x178] sm:$0xff] }
  0x2c   :  { %456 = vst [vmem:[#allocation7 + $0xe0] sm:$0xff] %v328_v26  ;;  %v219_v12 = vld [vmem:[#allocation5 + $0x178] sm:$0xff]  ;;  %v345_v13 = vadd.f32 %v217_v6, %v89_v5  ;;  %v92_v14 = vld [vmem:[#allocation2 + $0x180] sm:$0xff]  ;;  %v346_v16 = vadd.f32 %v218_v9, %v90_v8  ;;  %v93_v17 = vld [vmem:[#allocation2 + $0x188] sm:$0xff] }
  0x2d   :  { %457 = vst [vmem:[#allocation7 + $0xe8] sm:$0xff] %v329_v29  ;;  %v220_v15 = vld [vmem:[#allocation5 + $0x180] sm:$0xff]  ;;  %v221_v18 = vld [vmem:[#allocation5 + $0x188] sm:$0xff]  ;;  %v347_v19 = vadd.f32 %v219_v12, %v91_v11  ;;  %v94_v20 = vld [vmem:[#allocation2 + $0x190] sm:$0xff] }
  0x2e   :  { %458 = vst [vmem:[#allocation7 + $0xf0] sm:$0xff] %v330_v32  ;;  %v222_v21 = vld [vmem:[#allocation5 + $0x190] sm:$0xff]  ;;  %v348_v22 = vadd.f32 %v220_v15, %v92_v14  ;;  %v95_v23 = vld [vmem:[#allocation2 + $0x198] sm:$0xff]  ;;  %v349_v25 = vadd.f32 %v221_v18, %v93_v17  ;;  %v96_v26 = vld [vmem:[#allocation2 + $0x1a0] sm:$0xff] }
  0x2f   :  { %459 = vst [vmem:[#allocation7 + $0xf8] sm:$0xff] %v331_v35  ;;  %v223_v24 = vld [vmem:[#allocation5 + $0x198] sm:$0xff]  ;;  %v224_v27 = vld [vmem:[#allocation5 + $0x1a0] sm:$0xff]  ;;  %v350_v28 = vadd.f32 %v222_v21, %v94_v20  ;;  %v97_v29 = vld [vmem:[#allocation2 + $0x1a8] sm:$0xff] }
  0x30   :  { %460 = vst [vmem:[#allocation7 + $0x100] sm:$0xff] %v332_v38  ;;  %v225_v30 = vld [vmem:[#allocation5 + $0x1a8] sm:$0xff]  ;;  %v351_v31 = vadd.f32 %v223_v24, %v95_v23  ;;  %v98_v32 = vld [vmem:[#allocation2 + $0x1b0] sm:$0xff]  ;;  %v352_v34 = vadd.f32 %v224_v27, %v96_v26  ;;  %v99_v35 = vld [vmem:[#allocation2 + $0x1b8] sm:$0xff] }
  0x31   :  { %461 = vst [vmem:[#allocation7 + $0x108] sm:$0xff] %v333_v41  ;;  %v226_v33 = vld [vmem:[#allocation5 + $0x1b0] sm:$0xff]  ;;  %v227_v36 = vld [vmem:[#allocation5 + $0x1b8] sm:$0xff]  ;;  %v353_v37 = vadd.f32 %v225_v30, %v97_v29  ;;  %v100_v38 = vld [vmem:[#allocation2 + $0x1c0] sm:$0xff] }
  0x32   :  { %462 = vst [vmem:[#allocation7 + $0x110] sm:$0xff] %v334_v44  ;;  %v228_v39 = vld [vmem:[#allocation5 + $0x1c0] sm:$0xff]  ;;  %v354_v40 = vadd.f32 %v226_v33, %v98_v32  ;;  %v101_v41 = vld [vmem:[#allocation2 + $0x1c8] sm:$0xff]  ;;  %v355_v43 = vadd.f32 %v227_v36, %v99_v35  ;;  %v102_v44 = vld [vmem:[#allocation2 + $0x1d0] sm:$0xff] }
  0x33   :  { %463 = vst [vmem:[#allocation7 + $0x118] sm:$0xff] %v335_v47  ;;  %v229_v42 = vld [vmem:[#allocation5 + $0x1c8] sm:$0xff]  ;;  %v230_v45 = vld [vmem:[#allocation5 + $0x1d0] sm:$0xff]  ;;  %v356_v46 = vadd.f32 %v228_v39, %v100_v38  ;;  %v103_v47 = vld [vmem:[#allocation2 + $0x1d8] sm:$0xff] }
  0x34   :  { %464 = vst [vmem:[#allocation7 + $0x120] sm:$0xff] %v336_v50  ;;  %v231_v48 = vld [vmem:[#allocation5 + $0x1d8] sm:$0xff]  ;;  %v357_v49 = vadd.f32 %v229_v42, %v101_v41  ;;  %v104_v50 = vld [vmem:[#allocation2 + $0x1e0] sm:$0xff]  ;;  %v358_v52 = vadd.f32 %v230_v45, %v102_v44  ;;  %v233_v54 = vld [vmem:[#allocation5 + $0x1e8] sm:$0xff] }
  0x35   :  { %465 = vst [vmem:[#allocation7 + $0x128] sm:$0xff] %v337_v53  ;;  %v232_v51 = vld [vmem:[#allocation5 + $0x1e0] sm:$0xff]  ;;  %v105_v53 = vld [vmem:[#allocation2 + $0x1e8] sm:$0xff]  ;;  %v359_v55 = vadd.f32 %v231_v48, %v103_v47  ;;  %v234_v57 = vld [vmem:[#allocation5 + $0x1f0] sm:$0xff] }
  0x36   :  { %466 = vst [vmem:[#allocation7 + $0x130] sm:$0xff] %v338_v56  ;;  %v106_v56 = vld [vmem:[#allocation2 + $0x1f0] sm:$0xff]  ;;  %v360_v58 = vadd.f32 %v232_v51, %v104_v50  ;;  %v235_v60 = vld [vmem:[#allocation5 + $0x1f8] sm:$0xff]  ;;  %v361_v61 = vadd.f32 %v233_v54, %v105_v53  ;;  %v236_v63 = vld [vmem:[#allocation5 + $0x200] sm:$0xff] }
  0x37   :  { %467 = vst [vmem:[#allocation7 + $0x138] sm:$0xff] %v339_v59  ;;  %v107_v59 = vld [vmem:[#allocation2 + $0x1f8] sm:$0xff]  ;;  %v362_v0 = vadd.f32 %v234_v57, %v106_v56  ;;  %v237_v2 = vld [vmem:[#allocation5 + $0x208] sm:$0xff]  ;;  %v238_v5 = vld [vmem:[#allocation5 + $0x210] sm:$0xff] }
  0x38   :  { %468 = vst [vmem:[#allocation7 + $0x140] sm:$0xff] %v340_v62  ;;  %v108_v62 = vld [vmem:[#allocation2 + $0x200] sm:$0xff]  ;;  %v363_v3 = vadd.f32 %v235_v60, %v107_v59  ;;  %v239_v8 = vld [vmem:[#allocation5 + $0x218] sm:$0xff]  ;;  %v241_v14 = vld [vmem:[#allocation5 + $0x228] sm:$0xff] }
  0x39   :  { %469 = vst [vmem:[#allocation7 + $0x148] sm:$0xff] %v341_v1  ;;  %v109_v1 = vld [vmem:[#allocation2 + $0x208] sm:$0xff]  ;;  %v364_v6 = vadd.f32 %v236_v63, %v108_v62  ;;  %v240_v11 = vld [vmem:[#allocation5 + $0x220] sm:$0xff]  ;;  %v242_v17 = vld [vmem:[#allocation5 + $0x230] sm:$0xff] }
  0x3a   :  { %470 = vst [vmem:[#allocation7 + $0x150] sm:$0xff] %v342_v4  ;;  %v110_v4 = vld [vmem:[#allocation2 + $0x210] sm:$0xff]  ;;  %v365_v9 = vadd.f32 %v237_v2, %v109_v1  ;;  %v243_v20 = vld [vmem:[#allocation5 + $0x238] sm:$0xff]  ;;  %v244_v23 = vld [vmem:[#allocation5 + $0x240] sm:$0xff] }
  0x3b   :  { %471 = vst [vmem:[#allocation7 + $0x158] sm:$0xff] %v343_v7  ;;  %v111_v7 = vld [vmem:[#allocation2 + $0x218] sm:$0xff]  ;;  %v366_v12 = vadd.f32 %v238_v5, %v110_v4  ;;  %v245_v26 = vld [vmem:[#allocation5 + $0x248] sm:$0xff]  ;;  %v246_v29 = vld [vmem:[#allocation5 + $0x250] sm:$0xff] }
  0x3c   :  { %472 = vst [vmem:[#allocation7 + $0x160] sm:$0xff] %v344_v10  ;;  %v112_v10 = vld [vmem:[#allocation2 + $0x220] sm:$0xff]  ;;  %v367_v15 = vadd.f32 %v239_v8, %v111_v7  ;;  %v247_v32 = vld [vmem:[#allocation5 + $0x258] sm:$0xff]  ;;  %v249_v38 = vld [vmem:[#allocation5 + $0x268] sm:$0xff] }
  0x3d   :  { %473 = vst [vmem:[#allocation7 + $0x168] sm:$0xff] %v345_v13  ;;  %v113_v13 = vld [vmem:[#allocation2 + $0x228] sm:$0xff]  ;;  %v368_v18 = vadd.f32 %v240_v11, %v112_v10  ;;  %v248_v35 = vld [vmem:[#allocation5 + $0x260] sm:$0xff]  ;;  %v250_v41 = vld [vmem:[#allocation5 + $0x270] sm:$0xff] }
  0x3e   :  { %474 = vst [vmem:[#allocation7 + $0x170] sm:$0xff] %v346_v16  ;;  %v114_v16 = vld [vmem:[#allocation2 + $0x230] sm:$0xff]  ;;  %v369_v21 = vadd.f32 %v241_v14, %v113_v13  ;;  %v251_v44 = vld [vmem:[#allocation5 + $0x278] sm:$0xff]  ;;  %v252_v47 = vld [vmem:[#allocation5 + $0x280] sm:$0xff] }
  0x3f   :  { %475 = vst [vmem:[#allocation7 + $0x178] sm:$0xff] %v347_v19  ;;  %v115_v19 = vld [vmem:[#allocation2 + $0x238] sm:$0xff]  ;;  %v370_v24 = vadd.f32 %v242_v17, %v114_v16  ;;  %v253_v50 = vld [vmem:[#allocation5 + $0x288] sm:$0xff]  ;;  %v254_v53 = vld [vmem:[#allocation5 + $0x290] sm:$0xff] }
  0x40   :  { %476 = vst [vmem:[#allocation7 + $0x180] sm:$0xff] %v348_v22  ;;  %v116_v22 = vld [vmem:[#allocation2 + $0x240] sm:$0xff]  ;;  %v371_v27 = vadd.f32 %v243_v20, %v115_v19  ;;  %v255_v56 = vld [vmem:[#allocation5 + $0x298] sm:$0xff]  ;;  %v257_v62 = vld [vmem:[#allocation5 + $0x2a8] sm:$0xff] }
  0x41   :  { %477 = vst [vmem:[#allocation7 + $0x188] sm:$0xff] %v349_v25  ;;  %v117_v25 = vld [vmem:[#allocation2 + $0x248] sm:$0xff]  ;;  %v372_v30 = vadd.f32 %v244_v23, %v116_v22  ;;  %v256_v59 = vld [vmem:[#allocation5 + $0x2a0] sm:$0xff]  ;;  %v258_v1 = vld [vmem:[#allocation5 + $0x2b0] sm:$0xff] }
  0x42   :  { %478 = vst [vmem:[#allocation7 + $0x190] sm:$0xff] %v350_v28  ;;  %v118_v28 = vld [vmem:[#allocation2 + $0x250] sm:$0xff]  ;;  %v373_v33 = vadd.f32 %v245_v26, %v117_v25  ;;  %v259_v4 = vld [vmem:[#allocation5 + $0x2b8] sm:$0xff]  ;;  %v260_v7 = vld [vmem:[#allocation5 + $0x2c0] sm:$0xff] }
  0x43   :  { %479 = vst [vmem:[#allocation7 + $0x198] sm:$0xff] %v351_v31  ;;  %v119_v31 = vld [vmem:[#allocation2 + $0x258] sm:$0xff]  ;;  %v374_v36 = vadd.f32 %v246_v29, %v118_v28  ;;  %v261_v10 = vld [vmem:[#allocation5 + $0x2c8] sm:$0xff]  ;;  %v262_v13 = vld [vmem:[#allocation5 + $0x2d0] sm:$0xff] }
  0x44   :  { %480 = vst [vmem:[#allocation7 + $0x1a0] sm:$0xff] %v352_v34  ;;  %v120_v34 = vld [vmem:[#allocation2 + $0x260] sm:$0xff]  ;;  %v375_v39 = vadd.f32 %v247_v32, %v119_v31  ;;  %v263_v16 = vld [vmem:[#allocation5 + $0x2d8] sm:$0xff]  ;;  %v265_v22 = vld [vmem:[#allocation5 + $0x2e8] sm:$0xff] }
  0x45   :  { %481 = vst [vmem:[#allocation7 + $0x1a8] sm:$0xff] %v353_v37  ;;  %v121_v37 = vld [vmem:[#allocation2 + $0x268] sm:$0xff]  ;;  %v376_v42 = vadd.f32 %v248_v35, %v120_v34  ;;  %v264_v19 = vld [vmem:[#allocation5 + $0x2e0] sm:$0xff]  ;;  %v266_v25 = vld [vmem:[#allocation5 + $0x2f0] sm:$0xff] }
  0x46   :  { %482 = vst [vmem:[#allocation7 + $0x1b0] sm:$0xff] %v354_v40  ;;  %v122_v40 = vld [vmem:[#allocation2 + $0x270] sm:$0xff]  ;;  %v377_v45 = vadd.f32 %v249_v38, %v121_v37  ;;  %v267_v28 = vld [vmem:[#allocation5 + $0x2f8] sm:$0xff]  ;;  %v268_v31 = vld [vmem:[#allocation5 + $0x300] sm:$0xff] }
  0x47   :  { %483 = vst [vmem:[#allocation7 + $0x1b8] sm:$0xff] %v355_v43  ;;  %v123_v43 = vld [vmem:[#allocation2 + $0x278] sm:$0xff]  ;;  %v378_v48 = vadd.f32 %v250_v41, %v122_v40  ;;  %v269_v34 = vld [vmem:[#allocation5 + $0x308] sm:$0xff]  ;;  %v270_v37 = vld [vmem:[#allocation5 + $0x310] sm:$0xff] }
  0x48   :  { %484 = vst [vmem:[#allocation7 + $0x1c0] sm:$0xff] %v356_v46  ;;  %v124_v46 = vld [vmem:[#allocation2 + $0x280] sm:$0xff]  ;;  %v379_v51 = vadd.f32 %v251_v44, %v123_v43  ;;  %v271_v40 = vld [vmem:[#allocation5 + $0x318] sm:$0xff] }
  0x49   :  { %485 = vst [vmem:[#allocation7 + $0x1c8] sm:$0xff] %v357_v49  ;;  %v125_v49 = vld [vmem:[#allocation2 + $0x288] sm:$0xff]  ;;  %v380_v54 = vadd.f32 %v252_v47, %v124_v46  ;;  %v272_v43 = vld [vmem:[#allocation5 + $0x320] sm:$0xff] }
  0x4a   :  { %486 = vst [vmem:[#allocation7 + $0x1d0] sm:$0xff] %v358_v52  ;;  %v126_v52 = vld [vmem:[#allocation2 + $0x290] sm:$0xff]  ;;  %v381_v57 = vadd.f32 %v253_v50, %v125_v49  ;;  %v273_v46 = vld [vmem:[#allocation5 + $0x328] sm:$0xff] }
  0x4b   :  { %487 = vst [vmem:[#allocation7 + $0x1d8] sm:$0xff] %v359_v55  ;;  %v127_v55 = vld [vmem:[#allocation2 + $0x298] sm:$0xff]  ;;  %v382_v60 = vadd.f32 %v254_v53, %v126_v52  ;;  %v274_v49 = vld [vmem:[#allocation5 + $0x330] sm:$0xff] }
  0x4c   :  { %488 = vst [vmem:[#allocation7 + $0x1e0] sm:$0xff] %v360_v58  ;;  %v128_v58 = vld [vmem:[#allocation2 + $0x2a0] sm:$0xff]  ;;  %v383_v63 = vadd.f32 %v255_v56, %v127_v55  ;;  %v275_v52 = vld [vmem:[#allocation5 + $0x338] sm:$0xff] }
  0x4d   :  { %489 = vst [vmem:[#allocation7 + $0x1e8] sm:$0xff] %v361_v61  ;;  %v129_v61 = vld [vmem:[#allocation2 + $0x2a8] sm:$0xff]  ;;  %v384_v2 = vadd.f32 %v256_v59, %v128_v58  ;;  %v276_v55 = vld [vmem:[#allocation5 + $0x340] sm:$0xff] }
  0x4e   :  { %490 = vst [vmem:[#allocation7 + $0x1f0] sm:$0xff] %v362_v0  ;;  %v130_v0 = vld [vmem:[#allocation2 + $0x2b0] sm:$0xff]  ;;  %v385_v5 = vadd.f32 %v257_v62, %v129_v61  ;;  %v277_v58 = vld [vmem:[#allocation5 + $0x348] sm:$0xff] }
  0x4f   :  { %491 = vst [vmem:[#allocation7 + $0x1f8] sm:$0xff] %v363_v3  ;;  %v131_v3 = vld [vmem:[#allocation2 + $0x2b8] sm:$0xff]  ;;  %v386_v8 = vadd.f32 %v258_v1, %v130_v0  ;;  %v278_v61 = vld [vmem:[#allocation5 + $0x350] sm:$0xff] }
  0x50   :  { %492 = vst [vmem:[#allocation7 + $0x200] sm:$0xff] %v364_v6  ;;  %v132_v6 = vld [vmem:[#allocation2 + $0x2c0] sm:$0xff]  ;;  %v387_v11 = vadd.f32 %v259_v4, %v131_v3  ;;  %v279_v0 = vld [vmem:[#allocation5 + $0x358] sm:$0xff] }
  0x51   :  { %493 = vst [vmem:[#allocation7 + $0x208] sm:$0xff] %v365_v9  ;;  %v133_v9 = vld [vmem:[#allocation2 + $0x2c8] sm:$0xff]  ;;  %v388_v14 = vadd.f32 %v260_v7, %v132_v6  ;;  %v280_v3 = vld [vmem:[#allocation5 + $0x360] sm:$0xff] }
  0x52   :  { %494 = vst [vmem:[#allocation7 + $0x210] sm:$0xff] %v366_v12  ;;  %v134_v12 = vld [vmem:[#allocation2 + $0x2d0] sm:$0xff]  ;;  %v389_v17 = vadd.f32 %v261_v10, %v133_v9  ;;  %v281_v6 = vld [vmem:[#allocation5 + $0x368] sm:$0xff] }
  0x53   :  { %495 = vst [vmem:[#allocation7 + $0x218] sm:$0xff] %v367_v15  ;;  %v135_v15 = vld [vmem:[#allocation2 + $0x2d8] sm:$0xff]  ;;  %v390_v20 = vadd.f32 %v262_v13, %v134_v12  ;;  %v282_v9 = vld [vmem:[#allocation5 + $0x370] sm:$0xff] }
  0x54   :  { %496 = vst [vmem:[#allocation7 + $0x220] sm:$0xff] %v368_v18  ;;  %v136_v18 = vld [vmem:[#allocation2 + $0x2e0] sm:$0xff]  ;;  %v391_v23 = vadd.f32 %v263_v16, %v135_v15  ;;  %v283_v12 = vld [vmem:[#allocation5 + $0x378] sm:$0xff] }
  0x55   :  { %497 = vst [vmem:[#allocation7 + $0x228] sm:$0xff] %v369_v21  ;;  %v137_v21 = vld [vmem:[#allocation2 + $0x2e8] sm:$0xff]  ;;  %v392_v26 = vadd.f32 %v264_v19, %v136_v18  ;;  %v284_v15 = vld [vmem:[#allocation5 + $0x380] sm:$0xff] }
  0x56   :  { %498 = vst [vmem:[#allocation7 + $0x230] sm:$0xff] %v370_v24  ;;  %v138_v24 = vld [vmem:[#allocation2 + $0x2f0] sm:$0xff]  ;;  %v393_v29 = vadd.f32 %v265_v22, %v137_v21  ;;  %v285_v18 = vld [vmem:[#allocation5 + $0x388] sm:$0xff] }
  0x57   :  { %499 = vst [vmem:[#allocation7 + $0x238] sm:$0xff] %v371_v27  ;;  %v139_v27 = vld [vmem:[#allocation2 + $0x2f8] sm:$0xff]  ;;  %v394_v32 = vadd.f32 %v266_v25, %v138_v24  ;;  %v286_v21 = vld [vmem:[#allocation5 + $0x390] sm:$0xff] }
  0x58   :  { %500 = vst [vmem:[#allocation7 + $0x240] sm:$0xff] %v372_v30  ;;  %v140_v30 = vld [vmem:[#allocation2 + $0x300] sm:$0xff]  ;;  %v395_v35 = vadd.f32 %v267_v28, %v139_v27  ;;  %v287_v24 = vld [vmem:[#allocation5 + $0x398] sm:$0xff] }
  0x59   :  { %501 = vst [vmem:[#allocation7 + $0x248] sm:$0xff] %v373_v33  ;;  %v141_v33 = vld [vmem:[#allocation2 + $0x308] sm:$0xff]  ;;  %v396_v38 = vadd.f32 %v268_v31, %v140_v30  ;;  %v288_v27 = vld [vmem:[#allocation5 + $0x3a0] sm:$0xff] }
  0x5a   :  { %502 = vst [vmem:[#allocation7 + $0x250] sm:$0xff] %v374_v36  ;;  %v142_v36 = vld [vmem:[#allocation2 + $0x310] sm:$0xff]  ;;  %v397_v41 = vadd.f32 %v269_v34, %v141_v33  ;;  %v289_v30 = vld [vmem:[#allocation5 + $0x3a8] sm:$0xff] }
  0x5b   :  { %503 = vst [vmem:[#allocation7 + $0x258] sm:$0xff] %v375_v39  ;;  %v143_v39 = vld [vmem:[#allocation2 + $0x318] sm:$0xff]  ;;  %v398_v44 = vadd.f32 %v270_v37, %v142_v36  ;;  %v290_v33 = vld [vmem:[#allocation5 + $0x3b0] sm:$0xff] }
  0x5c   :  { %504 = vst [vmem:[#allocation7 + $0x260] sm:$0xff] %v376_v42  ;;  %v144_v42 = vld [vmem:[#allocation2 + $0x320] sm:$0xff]  ;;  %v399_v47 = vadd.f32 %v271_v40, %v143_v39  ;;  %v291_v36 = vld [vmem:[#allocation5 + $0x3b8] sm:$0xff] }
  0x5d   :  { %505 = vst [vmem:[#allocation7 + $0x268] sm:$0xff] %v377_v45  ;;  %v145_v45 = vld [vmem:[#allocation2 + $0x328] sm:$0xff]  ;;  %v400_v50 = vadd.f32 %v272_v43, %v144_v42  ;;  %v292_v39 = vld [vmem:[#allocation5 + $0x3c0] sm:$0xff] }
  0x5e   :  { %506 = vst [vmem:[#allocation7 + $0x270] sm:$0xff] %v378_v48  ;;  %v146_v48 = vld [vmem:[#allocation2 + $0x330] sm:$0xff]  ;;  %v401_v53 = vadd.f32 %v273_v46, %v145_v45  ;;  %v293_v42 = vld [vmem:[#allocation5 + $0x3c8] sm:$0xff] }
  0x5f   :  { %507 = vst [vmem:[#allocation7 + $0x278] sm:$0xff] %v379_v51  ;;  %v147_v51 = vld [vmem:[#allocation2 + $0x338] sm:$0xff]  ;;  %v402_v56 = vadd.f32 %v274_v49, %v146_v48  ;;  %v294_v45 = vld [vmem:[#allocation5 + $0x3d0] sm:$0xff] }
  0x60   :  { %508 = vst [vmem:[#allocation7 + $0x280] sm:$0xff] %v380_v54  ;;  %v148_v54 = vld [vmem:[#allocation2 + $0x340] sm:$0xff]  ;;  %v403_v59 = vadd.f32 %v275_v52, %v147_v51  ;;  %v295_v48 = vld [vmem:[#allocation5 + $0x3d8] sm:$0xff] }
  0x61   :  { %509 = vst [vmem:[#allocation7 + $0x288] sm:$0xff] %v381_v57  ;;  %v149_v57 = vld [vmem:[#allocation2 + $0x348] sm:$0xff]  ;;  %v404_v62 = vadd.f32 %v276_v55, %v148_v54  ;;  %v296_v51 = vld [vmem:[#allocation5 + $0x3e0] sm:$0xff] }
  0x62   :  { %510 = vst [vmem:[#allocation7 + $0x290] sm:$0xff] %v382_v60  ;;  %v150_v60 = vld [vmem:[#allocation2 + $0x350] sm:$0xff]  ;;  %v405_v1 = vadd.f32 %v277_v58, %v149_v57  ;;  %v297_v54 = vld [vmem:[#allocation5 + $0x3e8] sm:$0xff] }
  0x63   :  { %511 = vst [vmem:[#allocation7 + $0x298] sm:$0xff] %v383_v63  ;;  %v151_v63 = vld [vmem:[#allocation2 + $0x358] sm:$0xff]  ;;  %v406_v4 = vadd.f32 %v278_v61, %v150_v60  ;;  %v298_v57 = vld [vmem:[#allocation5 + $0x3f0] sm:$0xff] }
  0x64   :  { %512 = vst [vmem:[#allocation7 + $0x2a0] sm:$0xff] %v384_v2  ;;  %v152_v2 = vld [vmem:[#allocation2 + $0x360] sm:$0xff]  ;;  %v407_v7 = vadd.f32 %v279_v0, %v151_v63  ;;  %v299_v60 = vld [vmem:[#allocation5 + $0x3f8] sm:$0xff] }
  0x65   :  { %513 = vst [vmem:[#allocation7 + $0x2a8] sm:$0xff] %v385_v5  ;;  %v153_v5 = vld [vmem:[#allocation2 + $0x368] sm:$0xff]  ;;  %v408_v10 = vadd.f32 %v280_v3, %v152_v2 }
  0x66   :  { %514 = vst [vmem:[#allocation7 + $0x2b0] sm:$0xff] %v386_v8  ;;  %v154_v8 = vld [vmem:[#allocation2 + $0x370] sm:$0xff]  ;;  %v409_v13 = vadd.f32 %v281_v6, %v153_v5 }
  0x67   :  { %515 = vst [vmem:[#allocation7 + $0x2b8] sm:$0xff] %v387_v11  ;;  %v155_v11 = vld [vmem:[#allocation2 + $0x378] sm:$0xff]  ;;  %v410_v16 = vadd.f32 %v282_v9, %v154_v8 }
  0x68   :  { %516 = vst [vmem:[#allocation7 + $0x2c0] sm:$0xff] %v388_v14  ;;  %v156_v14 = vld [vmem:[#allocation2 + $0x380] sm:$0xff]  ;;  %v411_v19 = vadd.f32 %v283_v12, %v155_v11 }
  0x69   :  { %517 = vst [vmem:[#allocation7 + $0x2c8] sm:$0xff] %v389_v17  ;;  %v157_v17 = vld [vmem:[#allocation2 + $0x388] sm:$0xff]  ;;  %v412_v22 = vadd.f32 %v284_v15, %v156_v14 }
  0x6a   :  { %518 = vst [vmem:[#allocation7 + $0x2d0] sm:$0xff] %v390_v20  ;;  %v158_v20 = vld [vmem:[#allocation2 + $0x390] sm:$0xff]  ;;  %v413_v25 = vadd.f32 %v285_v18, %v157_v17 }
  0x6b   :  { %519 = vst [vmem:[#allocation7 + $0x2d8] sm:$0xff] %v391_v23  ;;  %v159_v23 = vld [vmem:[#allocation2 + $0x398] sm:$0xff]  ;;  %v414_v28 = vadd.f32 %v286_v21, %v158_v20 }
  0x6c   :  { %520 = vst [vmem:[#allocation7 + $0x2e0] sm:$0xff] %v392_v26  ;;  %v160_v26 = vld [vmem:[#allocation2 + $0x3a0] sm:$0xff]  ;;  %v415_v31 = vadd.f32 %v287_v24, %v159_v23 }
  0x6d   :  { %521 = vst [vmem:[#allocation7 + $0x2e8] sm:$0xff] %v393_v29  ;;  %v161_v29 = vld [vmem:[#allocation2 + $0x3a8] sm:$0xff]  ;;  %v416_v34 = vadd.f32 %v288_v27, %v160_v26 }
  0x6e   :  { %522 = vst [vmem:[#allocation7 + $0x2f0] sm:$0xff] %v394_v32  ;;  %v162_v32 = vld [vmem:[#allocation2 + $0x3b0] sm:$0xff]  ;;  %v417_v37 = vadd.f32 %v289_v30, %v161_v29 }
  0x6f   :  { %523 = vst [vmem:[#allocation7 + $0x2f8] sm:$0xff] %v395_v35  ;;  %v163_v35 = vld [vmem:[#allocation2 + $0x3b8] sm:$0xff]  ;;  %v418_v40 = vadd.f32 %v290_v33, %v162_v32 }
  0x70   :  { %524 = vst [vmem:[#allocation7 + $0x300] sm:$0xff] %v396_v38  ;;  %v164_v38 = vld [vmem:[#allocation2 + $0x3c0] sm:$0xff]  ;;  %v419_v43 = vadd.f32 %v291_v36, %v163_v35 }
  0x71   :  { %525 = vst [vmem:[#allocation7 + $0x308] sm:$0xff] %v397_v41  ;;  %v165_v41 = vld [vmem:[#allocation2 + $0x3c8] sm:$0xff]  ;;  %v420_v46 = vadd.f32 %v292_v39, %v164_v38 }
  0x72   :  { %526 = vst [vmem:[#allocation7 + $0x310] sm:$0xff] %v398_v44  ;;  %v166_v44 = vld [vmem:[#allocation2 + $0x3d0] sm:$0xff]  ;;  %v421_v49 = vadd.f32 %v293_v42, %v165_v41 }
  0x73   :  { %527 = vst [vmem:[#allocation7 + $0x318] sm:$0xff] %v399_v47  ;;  %v167_v47 = vld [vmem:[#allocation2 + $0x3d8] sm:$0xff]  ;;  %v422_v52 = vadd.f32 %v294_v45, %v166_v44 }
  0x74   :  { %528 = vst [vmem:[#allocation7 + $0x320] sm:$0xff] %v400_v50  ;;  %v168_v50 = vld [vmem:[#allocation2 + $0x3e0] sm:$0xff]  ;;  %v423_v55 = vadd.f32 %v295_v48, %v167_v47 }
  0x75   :  { %529 = vst [vmem:[#allocation7 + $0x328] sm:$0xff] %v401_v53  ;;  %v169_v53 = vld [vmem:[#allocation2 + $0x3e8] sm:$0xff]  ;;  %v424_v58 = vadd.f32 %v296_v51, %v168_v50 }
  0x76   :  { %530 = vst [vmem:[#allocation7 + $0x330] sm:$0xff] %v402_v56  ;;  %v170_v56 = vld [vmem:[#allocation2 + $0x3f0] sm:$0xff]  ;;  %v425_v61 = vadd.f32 %v297_v54, %v169_v53 }
  0x77   :  { %531 = vst [vmem:[#allocation7 + $0x338] sm:$0xff] %v403_v59  ;;  %v171_v59 = vld [vmem:[#allocation2 + $0x3f8] sm:$0xff] }
  0x78   :  { %532 = vst [vmem:[#allocation7 + $0x340] sm:$0xff] %v404_v62  ;;  %v426_v62 = vadd.f32 %v298_v57, %v170_v56  ;;  %v427_v63 = vadd.f32 %v299_v60, %v171_v59 }
  0x79   :  { %533 = vst [vmem:[#allocation7 + $0x348] sm:$0xff] %v405_v1 }
  0x7a   :  { %534 = vst [vmem:[#allocation7 + $0x350] sm:$0xff] %v406_v4 }
  0x7b   :  { %535 = vst [vmem:[#allocation7 + $0x358] sm:$0xff] %v407_v7 }
  0x7c   :  { %536 = vst [vmem:[#allocation7 + $0x360] sm:$0xff] %v408_v10 }
  0x7d   :  { %537 = vst [vmem:[#allocation7 + $0x368] sm:$0xff] %v409_v13 }
  0x7e   :  { %538 = vst [vmem:[#allocation7 + $0x370] sm:$0xff] %v410_v16 }
  0x7f   :  { %539 = vst [vmem:[#allocation7 + $0x378] sm:$0xff] %v411_v19 }
  0x80   :  { %540 = vst [vmem:[#allocation7 + $0x380] sm:$0xff] %v412_v22 }
  0x81   :  { %541 = vst [vmem:[#allocation7 + $0x388] sm:$0xff] %v413_v25 }
  0x82   :  { %542 = vst [vmem:[#allocation7 + $0x390] sm:$0xff] %v414_v28 }
  0x83   :  { %543 = vst [vmem:[#allocation7 + $0x398] sm:$0xff] %v415_v31 }
  0x84   :  { %544 = vst [vmem:[#allocation7 + $0x3a0] sm:$0xff] %v416_v34 }
  0x85   :  { %545 = vst [vmem:[#allocation7 + $0x3a8] sm:$0xff] %v417_v37 }
  0x86   :  { %546 = vst [vmem:[#allocation7 + $0x3b0] sm:$0xff] %v418_v40 }
  0x87   :  { %547 = vst [vmem:[#allocation7 + $0x3b8] sm:$0xff] %v419_v43 }
  0x88   :  { %548 = vst [vmem:[#allocation7 + $0x3c0] sm:$0xff] %v420_v46 }
  0x89   :  { %549 = vst [vmem:[#allocation7 + $0x3c8] sm:$0xff] %v421_v49 }
  0x8a   :  { %550 = vst [vmem:[#allocation7 + $0x3d0] sm:$0xff] %v422_v52 }
  0x8b   :  { %551 = vst [vmem:[#allocation7 + $0x3d8] sm:$0xff] %v423_v55 }
  0x8c   :  { %552 = vst [vmem:[#allocation7 + $0x3e0] sm:$0xff] %v424_v58 }
  0x8d   :  { %553 = vst [vmem:[#allocation7 + $0x3e8] sm:$0xff] %v425_v61 }
  0x8e   :  { %554 = vst [vmem:[#allocation7 + $0x3f0] sm:$0xff] %v426_v62 }
  0x8f   :  { %555 = vst [vmem:[#allocation7 + $0x3f8] sm:$0xff] %v427_v63 }
  0x90   :  { %568 = dma.vmem_to_hbm [thread:$0]  %s561_s1, 16384, %s563_s23, [#allocation4], %s660_s17, %s660_s17, %s661_s18  }
  0x91   :  { %657 = dma.done.wait [#allocation4], 16384  }
  0x92   :  { %658 = vsyncadd [#allocation4], 4294950912 }
  0x93   :  { %573 = vsyncpa [#allocation3], 1 }
  0x94   :  { %574 = vsyncpa [#allocation6], 1 }
  0x95   :  { %575 = vsyncpa [#allocation4], 1 }

</bundles_post_ra>
